<compile_context>
chip_gen: v7x
topology: tpu7x:2x2x1
jax: 0.10.0
libtpu: 0.0.40
codegen_flags: <defaults>
</compile_context>

<pallas_src>
import jax
import jax.numpy as jnp
from jax.experimental import pallas as pl
from jax.experimental.pallas import tpu as pltpu

OUT_FEATURES = 2

# Aim for ~8 MiB x tiles: ~2.5 us/step even at v7x's 3.2 TB/s HBM, so the
# ~0.35 us fixed per-step overhead stays <15% of the memory-bound time.
_X_TILE_TARGET_BYTES = 8 * 1024 * 1024
_MIN_BLOCK_ROWS = 2048


def _vmem_budget_and_limit():
    """Generation-aware (budget, scoped-limit) in bytes."""
    try:
        cap = int(getattr(pltpu.get_tpu_info(), "vmem_capacity_bytes", 0))
    except Exception:  # pragma: no cover - be robust if query unavailable
        cap = 0
    if cap >= (96 << 20):
        # v5e / v6e: 128 MiB physical VMEM -> large streaming tiles are free.
        return 80 << 20, 96 << 20
    # v7x (64 MiB per TC) or unknown: stay conservative so x double-buffer +
    # out + weights + compiler-internal scratch fits comfortably.
    return 36 << 20, 44 << 20


def _pick_block_rows(batch, in_size, itemsize, budget_bytes):
    """Largest useful batch tile whose pipelined footprint fits the budget."""
    lane_cols = -(-in_size // 128) * 128          # padded lane width in VMEM

    # Constant operands, double-buffered by the default pipeline:
    #   weight (2, in_size): ~8 sublanes x lane_cols x 4B (or 16 x lane_cols x 2B)
    #   bias (1, 2): one padded (8,128) f32 vreg tile.
    const_bytes = 2 * (32 * lane_cols) + 2 * 4096
    avail = max(budget_bytes - const_bytes, 1 << 20)

    # Per batch row: double-buffered x tile + double-buffered (lane-padded)
    # f32 output tile.
    per_row = 2 * lane_cols * itemsize + 2 * 128 * 4
    rows_cap = avail // per_row

    # Byte-based target: at least _MIN_BLOCK_ROWS rows and ~8 MiB of x.
    rows_target = max(_MIN_BLOCK_ROWS,
                      _X_TILE_TARGET_BYTES // (lane_cols * itemsize))
    rows = int(min(rows_cap, rows_target))

    align = 16 if itemsize < 4 else 8             # bf16 packs 2 rows/sublane
    rows = max(align, (rows // align) * align)
    if rows >= batch:
        return batch                              # full dim is always legal
    return rows


def _linear_kernel(x_ref, w_ref, b_ref, o_ref):
    # x_ref: (TM, D)   w_ref: (2, D) native nn.Linear layout   b_ref: (1, 2)
    # o_ref: (TM, 2)
    x = x_ref[...].astype(jnp.float32)            # in-VMEM upcast, hidden by DMA
    acc = jax.lax.dot_general(
        x, w_ref[...],
        dimension_numbers=(((1,), (1,)), ((), ())),
        preferred_element_type=jnp.float32)
    o_ref[...] = (acc + b_ref[...]).astype(o_ref.dtype)


def game_ends_predictor(x, weight, bias):
    """Forward pass of GameEndsPredictor.

    Args:
      x:      [..., in_size] float array (f32 or bf16; bf16 halves HBM reads;
              weights remain f32, so semantics stay those of f32 nn.Linear).
      weight: f32[2, in_size]  (PyTorch nn.Linear layout: [out, in])
      bias:   f32[2]
    Returns:
      (logits f32[..., 2], [])  -- matching the PyTorch module's return.
    """
    orig_shape = x.shape
    in_size = orig_shape[-1]
    x2 = x.reshape(-1, in_size)
    batch = x2.shape[0]

    w = weight.astype(jnp.float32)                       # (2, in_size), lane-dense
    b = bias.astype(jnp.float32).reshape(1, OUT_FEATURES)  # (1, 2)

    budget, vmem_limit = _vmem_budget_and_limit()
    tm = _pick_block_rows(batch, in_size, x2.dtype.itemsize, budget)
    grid = (pl.cdiv(batch, tm),)

    logits = pl.pallas_call(
        _linear_kernel,
        out_shape=jax.ShapeDtypeStruct((batch, OUT_FEATURES), jnp.float32),
        grid_spec=pltpu.PrefetchScalarGridSpec(
            num_scalar_prefetch=0,
            grid=grid,
            in_specs=[
                # x: tiled over batch; pipeline double-buffers the tiles.
                pl.BlockSpec((tm, in_size), lambda i: (i, 0)),
                # weight / bias: same block every step -> fetched once,
                # VMEM-resident for the whole grid.
                pl.BlockSpec((OUT_FEATURES, in_size), lambda i: (0, 0)),
                pl.BlockSpec((1, OUT_FEATURES), lambda i: (0, 0)),
            ],
            out_specs=pl.BlockSpec((tm, OUT_FEATURES), lambda i: (i, 0)),
        ),
        compiler_params=pltpu.CompilerParams(
            dimension_semantics=("parallel",),
            vmem_limit_bytes=vmem_limit,
        ),
    )(x2, w, b)

    return logits.reshape(orig_shape[:-1] + (OUT_FEATURES,)), []


game_ends_predictor_jit = jax.jit(game_ends_predictor)


if __name__ == "__main__":
    key = jax.random.PRNGKey(0)
    k_x, k_w, k_b = jax.random.split(key, 3)

    batch, in_size = 8, 32
    x = jax.random.normal(k_x, (batch, in_size), dtype=jnp.float32)

    # Deterministic synthetic parameters (shapes from nn.Linear(in_size, 2)).
    bound = 1.0 / float(in_size) ** 0.5
    weight = jax.random.uniform(k_w, (OUT_FEATURES, in_size),
                                minval=-bound, maxval=bound,
                                dtype=jnp.float32)
    bias = jax.random.uniform(k_b, (OUT_FEATURES,),
                              minval=-bound, maxval=bound,
                              dtype=jnp.float32)

    ref = x @ weight.T + bias

    # f32 path: exact module semantics.
    logits, state = game_ends_predictor_jit(x, weight, bias)
    logits = jax.block_until_ready(logits)
    assert logits.shape == (batch, OUT_FEATURES)
    assert state == []
    assert jnp.allclose(logits, ref, atol=1e-5, rtol=1e-5)

    # Reduced-precision activation path: bf16 x in HBM (halves the dominant
    # read traffic), f32 weights + f32 accumulation inside the kernel.
    logits_bf16, _ = game_ends_predictor_jit(x.astype(jnp.bfloat16),
                                             weight, bias)
    logits_bf16 = jax.block_until_ready(logits_bf16)
    assert jnp.allclose(logits_bf16, ref, atol=2e-2, rtol=2e-2)

    print("KERNEL_OK")
</pallas_src>

<mosaic_0001>
module attributes {stable_mosaic.version = 11 : i64} {
  func.func @_linear_kernel(%arg0: i32, %arg1: memref<8x32xf32, #tpu.memory_space<vmem>>, %arg2: memref<2x32xf32, #tpu.memory_space<vmem>>, %arg3: memref<1x2xf32, #tpu.memory_space<vmem>>, %arg4: memref<8x2xf32, #tpu.memory_space<vmem>>) attributes {dimension_semantics = [#tpu.dimension_semantics<parallel>], iteration_bounds = array<i64: 1>, scalar_prefetch = 0 : i64, scratch_operands = 0 : i64, tpu.core_type = #tpu.core_type<tc>, window_params = [{transform_indices = @transform_0, window_bounds = array<i64: 8, 32>}, {pipeline_mode = #tpu.pipeline_mode<synchronous>, transform_indices = @transform_1, window_bounds = array<i64: 2, 32>}, {pipeline_mode = #tpu.pipeline_mode<synchronous>, transform_indices = @transform_2, window_bounds = array<i64: 1, 2>}, {transform_indices = @transform_3, window_bounds = array<i64: 8, 2>}]} {
    %c0 = arith.constant 0 : index
    %c0_0 = arith.constant 0 : index
    %0 = vector.load %arg1[%c0, %c0_0] : memref<8x32xf32, #tpu.memory_space<vmem>>, vector<8x32xf32>
    %c0_1 = arith.constant 0 : index
    %c0_2 = arith.constant 0 : index
    %1 = vector.load %arg2[%c0_1, %c0_2] : memref<2x32xf32, #tpu.memory_space<vmem>>, vector<2x32xf32>
    %cst = arith.constant dense<0.000000e+00> : vector<8x2xf32>
    %2 = tpu.matmul %0, %1, %cst {dimension_numbers = #tpu.dot_dimension_numbers<[1], [1], [0], [0], [0, 0, 1, 0], [], []>} : vector<8x32xf32>, vector<2x32xf32>, vector<8x2xf32> -> vector<8x2xf32>
    %c0_3 = arith.constant 0 : index
    %c0_4 = arith.constant 0 : index
    %3 = vector.load %arg3[%c0_3, %c0_4] : memref<1x2xf32, #tpu.memory_space<vmem>>, vector<1x2xf32>
    %4 = vector.broadcast %3 : vector<1x2xf32> to vector<8x2xf32>
    %5 = arith.addf %2, %4 : vector<8x2xf32>
    %c0_5 = arith.constant 0 : index
    %c0_6 = arith.constant 0 : index
    %6 = vector.load %arg4[%c0_5, %c0_6] : memref<8x2xf32, #tpu.memory_space<vmem>>, vector<8x2xf32>
    tpu.vector_store %arg4[%c0_5, %c0_6], %5 {strides = array<i32>} : memref<8x2xf32, #tpu.memory_space<vmem>>, vector<8x2xf32>,
    return
  }
  func.func @transform_0(%arg0: i32) -> (i32, i32) {
    %c0_i32 = arith.constant 0 : i32
    %c0_i32_0 = arith.constant 0 : i32
    return %arg0, %c0_i32 : i32, i32
  }
  func.func @transform_1(%arg0: i32) -> (i32, i32) {
    %c0_i32 = arith.constant 0 : i32
    %c0_i32_0 = arith.constant 0 : i32
    %c0_i32_1 = arith.constant 0 : i32
    return %c0_i32, %c0_i32_0 : i32, i32
  }
  func.func @transform_2(%arg0: i32) -> (i32, i32) {
    %c0_i32 = arith.constant 0 : i32
    %c0_i32_0 = arith.constant 0 : i32
    %c0_i32_1 = arith.constant 0 : i32
    return %c0_i32, %c0_i32_0 : i32, i32
  }
  func.func @transform_3(%arg0: i32) -> (i32, i32) {
    %c0_i32 = arith.constant 0 : i32
    %c0_i32_0 = arith.constant 0 : i32
    return %arg0, %c0_i32 : i32, i32
  }
}

</mosaic_0001>

<bundles_post_ra>
// kernel: game_ends_predictor.1
= control target key start
LH: loop header
LB: loop body
LE: loop exit
PB: predicated region body
PF: predicated region fallthrough
CT: control target
= control target key end

     0   :  { %8 = vsyncpa [#allocation3], 0  ;;  %s156_s12 = smov [#allocation2]   ;;  %s200_s0 = inlined_call_operand.hbm [shape: f32[8,32], index: 0, kind: input, shape index: {}]   ;;  %s201_s1 = inlined_call_operand.vmem [shape: f32[2,32], index: 1, kind: input, shape index: {}]   ;;  %s202_s2 = inlined_call_operand.vmem [shape: f32[1,2], index: 2, kind: input, shape index: {}]   ;;  %s203_s3 = inlined_call_operand.vmem [shape: f32[8,2], index: 3, kind: output, shape index: {}]  }
   0x1   :  { %s15_s13 = sshll.u32 %s156_s12, 4  ;;  %s132_s16 = scalar_lea.hbm %s200_s0, 128  ;;  %s16_s13 = int_to_ptr.vmem [resolvable:$true] %s15_s13 }
   0x2   :  { %p133_p0 = scmp.ne.s32.totalorder %s200_s0, %s132_s16  ;;  %p136_p1 = scmp.lt.u32.totalorder %s132_s16, %s200_s0 }
   0x4   :  { %p138_p2 = pnand %p136_p1, %p133_p0 }
   0x6   :  { %141 = shalt.err (!%p138_p2)
}
   0x7   :  { %s142_s21 = scalar_lea.vmem %s16_s13, 128  ;;  %p147_p4 = scmp.lt.s32.totalorder %s16_s13, %s16_s13 }
   0x8   :  { %p143_p3 = scmp.ne.s32.totalorder %s16_s13, %s142_s21  ;;  %p148_p5 = scmp.lt.s32.totalorder %s142_s21, %s142_s21 }
   0xa   :  { %p149_p6 = por %p148_p5, %p147_p4 }
   0xc   :  { %p150_p7 = pnand %p149_p6, %p143_p3 }
   0xe   :  { %153 = shalt.err (!%p150_p7)
}
   0xf   :  { %18 = dma.hbm_to_vmem [thread:$0]  %s200_s0, 128, %s16_s13, [#allocation3]  }
  0x10   :  { %154 = dma.done.wait [#allocation3], 128  }
  0x11   :  { %155 = vsyncadd [#allocation3], 4294967168  ;;  %v157_v0 = vmov 0.0   ;;  %vm158_vm0 = vmmov 0   ;;  %vm35_vm1 = vcmask 261120   ;;  %v26_v2 = vld [vmem:[#allocation2] sm:$0xff] }
  0x12   :  { %124 = vmatprep.subr.mxu0 %v157_v0  ;;  %126 = vmatprep.mubr.msk.f32.mxu0 %vm158_vm0, %v157_v0  ;;  %v27_v1 = vld [vmem:[%s201_s1] sm:$0x3]  ;;  %vm112_vm2 = vcmask 15360  }
  0x13   :  { %125 = vmatpush3.xpose.msk.msra.mxu0 %vm35_vm1, %v27_v1  ;;  %v119_v3 = vld [vmem:[%s202_s2] ss:$0 sm:$0xff] }
  0x16   :  { %127 = vmatmul.mubr.msk.f32.vlgmr.msra.gmra.mrb[0].mxu0 %vm35_vm1, %v26_v2 }
  0xe9   :  { %v108_v4 = vpop.f32.mrb[0].mxu0 }
  0xea   :  { %v109_v5 = vadd.f32 %v119_v3, %v108_v4  ;;  %v128_v6 = vpop.f32.mrb[1].mxu0 }
  0xec   :  { %113 = vst.msk [vmem:[%s203_s3] sm:$0xff] %vm112_vm2, %v109_v5 }
  0xed   :  { %118 = vsyncpa [#allocation3], 1 }

</bundles_post_ra>
